<compile_context>
chip_gen: v7x
topology: tpu7x:2x2x1
jax: 0.10.0
libtpu: 0.0.40
codegen_flags: <defaults>
</compile_context>

<pallas_src>
import functools

import jax
import jax.numpy as jnp
from jax.experimental import pallas as pl
from jax.experimental.pallas import tpu as pltpu


def _cdiv(a, b):
    return (a + b - 1) // b


def _round_up(n, m):
    return ((n + m - 1) // m) * m


def _mlp_kernel(x_ref, w1_ref, b1_ref, w2_ref, b2_ref, w3_ref, b3_ref, o_ref):
    mm_dtype = w1_ref.dtype  # matmul input dtype (f32 or bf16); accum is f32
    # Layer 1: Linear + ReLU (bias/ReLU in f32)
    h = jnp.dot(x_ref[...], w1_ref[...], preferred_element_type=jnp.float32)
    h = jnp.maximum(h + b1_ref[...], 0.0)
    # Layer 2: Linear + ReLU
    h = jnp.dot(h.astype(mm_dtype), w2_ref[...],
                preferred_element_type=jnp.float32)
    h = jnp.maximum(h + b2_ref[...], 0.0)
    # Output layer: Linear + tanh (tanh runs on the EUP slot, real d_out only)
    o = jnp.dot(h.astype(mm_dtype), w3_ref[...],
                preferred_element_type=jnp.float32)
    o_ref[...] = jnp.tanh(o + b3_ref[...]).astype(o_ref.dtype)


def prepare_params(params, compute_dtype=None):
    """One-time, out-of-hot-path weight prep.

    Casts weights to the matmul input dtype (e.g. bf16 to halve weight/x HBM
    traffic — valid on v5e/v6e/v7x since only MXU inputs are narrowed) and
    keeps biases in f32 for the elementwise bias/ReLU/tanh math.
    """
    prepped = []
    for w, b in params:
        wp = w if compute_dtype is None else w.astype(compute_dtype)
        prepped.append((wp, b.astype(jnp.float32)))
    return tuple(prepped)


@functools.partial(jax.jit, static_argnames=("block_b",))
def simple_fc_forward(x, params, block_b=2048):
    """x: (B, input_size). params: prepare_params output, ((w1,b1),(w2,b2),(w3,b3))
    with w_k: (in_k, out_k), b_k: (1, out_k).

    block_b: max batch rows per grid step (sweep 1024-4096 for very large B).
    The matmul input dtype is taken from the (pre-cast) weights; if x arrives
    in a wider dtype it is cast once here — ideally the producer already
    provides x in that dtype.
    """
    (w1, b1), (w2, b2), (w3, b3) = params
    B, d_in = x.shape
    d_out = w3.shape[1]
    out_dtype = x.dtype
    mm_dtype = w1.dtype
    sublane = 16 if jnp.dtype(mm_dtype).itemsize < 4 else 8

    # --- Batch tiling ------------------------------------------------------
    # Balance tiles (no near-empty last tile), keep >=2 grid steps when the
    # batch allows it so the "parallel" axis uses both v7x TensorCores, and
    # align each tile to the sublane packing of the matmul dtype.
    n_tiles = _cdiv(B, block_b)
    if n_tiles == 1 and B >= 2 * sublane:
        n_tiles = 2
    blk = _round_up(_cdiv(B, n_tiles), sublane)
    B_pad = n_tiles * blk

    # Only batch-row padding (at most blk-ish rows total), never feature
    # padding: input/output HBM traffic stays at the real d_in / d_out widths.
    xin = x if x.dtype == mm_dtype else x.astype(mm_dtype)
    if B_pad != B:
        xin = jnp.pad(xin, ((0, B_pad - B), (0, 0)))

    def full_spec(a):
        # Small weight/bias tensors: whole-array block, resident every step.
        return pl.BlockSpec(a.shape, lambda i: (0,) * a.ndim)

    out = pl.pallas_call(
        _mlp_kernel,
        out_shape=jax.ShapeDtypeStruct((B_pad, d_out), out_dtype),
        grid_spec=pl.GridSpec(
            grid=(n_tiles,),
            in_specs=[
                # last dim == full array dim -> legal without 128 padding
                pl.BlockSpec((blk, d_in), lambda i: (i, 0)),
                full_spec(w1), full_spec(b1),
                full_spec(w2), full_spec(b2),
                full_spec(w3), full_spec(b3),
            ],
            out_specs=pl.BlockSpec((blk, d_out), lambda i: (i, 0)),
        ),
        compiler_params=pltpu.CompilerParams(
            dimension_semantics=("parallel",)),
    )(xin, w1, b1, w2, b2, w3, b3)

    return out[:B] if B_pad != B else out


def init_params(key, input_size, output_size, hidden_layer_size=32,
                scale_init_output_coef=3e-05):
    """Init matching the PyTorch module's shapes: hidden layers use
    nn.Linear's default uniform(-1/sqrt(fan_in), +...) init; the final layer
    is uniform(-coef, +coef) per the module. Weights stored as (in, out)."""
    dims = [input_size, hidden_layer_size, hidden_layer_size, output_size]
    params = []
    n_layers = len(dims) - 1
    for li, (d1, d2) in enumerate(zip(dims[:-1], dims[1:])):
        key, kw, kb = jax.random.split(key, 3)
        if li == n_layers - 1:
            bound = scale_init_output_coef
        else:
            bound = 1.0 / jnp.sqrt(float(d1))
        w = jax.random.uniform(kw, (d1, d2), jnp.float32, -bound, bound)
        b = jax.random.uniform(kb, (1, d2), jnp.float32, -bound, bound)
        params.append((w, b))
    return tuple(params)


def reference_forward(x, params):
    (w1, b1), (w2, b2), (w3, b3) = params
    h = jnp.maximum(x @ w1 + b1, 0.0)
    h = jnp.maximum(h @ w2 + b2, 0.0)
    return jnp.tanh(h @ w3 + b3)


if __name__ == "__main__":
    key = jax.random.PRNGKey(0)
    # Small shapes; batch intentionally NOT a multiple of 8 to exercise the
    # minimal batch-row padding path, feature dims NOT multiples of 128.
    batch, input_size, hidden, output_size = 37, 16, 32, 4

    key, kx = jax.random.split(key)
    x = jax.random.normal(kx, (batch, input_size), jnp.float32)
    params = init_params(key, input_size, output_size, hidden_layer_size=hidden)

    ref = reference_forward(x, params)

    # f32 path (exact vs reference). Weight prep hoisted out of the hot path.
    params_f32 = prepare_params(params)
    out = simple_fc_forward(x, params_f32)
    out = jax.block_until_ready(out)
    assert out.shape == (batch, output_size)
    assert jnp.allclose(out, ref, atol=1e-5, rtol=1e-5)

    # bf16 matmul-input path (HBM-traffic win on all generations; f32 MXU
    # accumulation and f32 elementwise math), loose tolerance vs f32 ref.
    params_bf16 = prepare_params(params, compute_dtype=jnp.bfloat16)
    out_bf16 = simple_fc_forward(x, params_bf16)
    out_bf16 = jax.block_until_ready(out_bf16)
    assert out_bf16.shape == (batch, output_size)
    assert jnp.allclose(out_bf16, ref, atol=1e-4, rtol=5e-2)

    print("KERNEL_OK")
</pallas_src>

<mosaic_0001>
module attributes {stable_mosaic.version = 11 : i64} {
  func.func @_mlp_kernel(%arg0: i32, %arg1: memref<24x16xf32, #tpu.memory_space<vmem>>, %arg2: memref<16x32xf32, #tpu.memory_space<vmem>>, %arg3: memref<1x32xf32, #tpu.memory_space<vmem>>, %arg4: memref<32x32xf32, #tpu.memory_space<vmem>>, %arg5: memref<1x32xf32, #tpu.memory_space<vmem>>, %arg6: memref<32x4xf32, #tpu.memory_space<vmem>>, %arg7: memref<1x4xf32, #tpu.memory_space<vmem>>, %arg8: memref<24x4xf32, #tpu.memory_space<vmem>>) attributes {dimension_semantics = [#tpu.dimension_semantics<parallel>], iteration_bounds = array<i64: 2>, scalar_prefetch = 0 : i64, scratch_operands = 0 : i64, tpu.core_type = #tpu.core_type<tc>, window_params = [{transform_indices = @transform_0, window_bounds = array<i64: 24, 16>}, {pipeline_mode = #tpu.pipeline_mode<synchronous>, transform_indices = @transform_1, window_bounds = array<i64: 16, 32>}, {pipeline_mode = #tpu.pipeline_mode<synchronous>, transform_indices = @transform_2, window_bounds = array<i64: 1, 32>}, {pipeline_mode = #tpu.pipeline_mode<synchronous>, transform_indices = @transform_3, window_bounds = array<i64: 32, 32>}, {pipeline_mode = #tpu.pipeline_mode<synchronous>, transform_indices = @transform_4, window_bounds = array<i64: 1, 32>}, {pipeline_mode = #tpu.pipeline_mode<synchronous>, transform_indices = @transform_5, window_bounds = array<i64: 32, 4>}, {pipeline_mode = #tpu.pipeline_mode<synchronous>, transform_indices = @transform_6, window_bounds = array<i64: 1, 4>}, {transform_indices = @transform_7, window_bounds = array<i64: 24, 4>}]} {
    %c0 = arith.constant 0 : index
    %c0_0 = arith.constant 0 : index
    %0 = vector.load %arg1[%c0, %c0_0] : memref<24x16xf32, #tpu.memory_space<vmem>>, vector<24x16xf32>
    %c0_1 = arith.constant 0 : index
    %c0_2 = arith.constant 0 : index
    %1 = vector.load %arg2[%c0_1, %c0_2] : memref<16x32xf32, #tpu.memory_space<vmem>>, vector<16x32xf32>
    %cst = arith.constant dense<0.000000e+00> : vector<24x32xf32>
    %2 = tpu.matmul %0, %1, %cst {dimension_numbers = #tpu.dot_dimension_numbers<[1], [0], [0], [1], [0, 0, 1, 1], [], []>} : vector<24x16xf32>, vector<16x32xf32>, vector<24x32xf32> -> vector<24x32xf32>
    %c0_3 = arith.constant 0 : index
    %c0_4 = arith.constant 0 : index
    %3 = vector.load %arg3[%c0_3, %c0_4] : memref<1x32xf32, #tpu.memory_space<vmem>>, vector<1x32xf32>
    %4 = vector.broadcast %3 : vector<1x32xf32> to vector<24x32xf32>
    %5 = arith.addf %2, %4 : vector<24x32xf32>
    %cst_5 = arith.constant 0.000000e+00 : f32
    %6 = vector.broadcast %cst_5 : f32 to vector<24x32xf32>
    %7 = arith.maximumf %5, %6 : vector<24x32xf32>
    %c0_6 = arith.constant 0 : index
    %c0_7 = arith.constant 0 : index
    %8 = vector.load %arg4[%c0_6, %c0_7] : memref<32x32xf32, #tpu.memory_space<vmem>>, vector<32x32xf32>
    %cst_8 = arith.constant dense<0.000000e+00> : vector<24x32xf32>
    %9 = tpu.matmul %7, %8, %cst_8 {dimension_numbers = #tpu.dot_dimension_numbers<[1], [0], [0], [1], [0, 0, 1, 1], [], []>} : vector<24x32xf32>, vector<32x32xf32>, vector<24x32xf32> -> vector<24x32xf32>
    %c0_9 = arith.constant 0 : index
    %c0_10 = arith.constant 0 : index
    %10 = vector.load %arg5[%c0_9, %c0_10] : memref<1x32xf32, #tpu.memory_space<vmem>>, vector<1x32xf32>
    %11 = vector.broadcast %10 : vector<1x32xf32> to vector<24x32xf32>
    %12 = arith.addf %9, %11 : vector<24x32xf32>
    %cst_11 = arith.constant 0.000000e+00 : f32
    %13 = vector.broadcast %cst_11 : f32 to vector<24x32xf32>
    %14 = arith.maximumf %12, %13 : vector<24x32xf32>
    %c0_12 = arith.constant 0 : index
    %c0_13 = arith.constant 0 : index
    %15 = vector.load %arg6[%c0_12, %c0_13] : memref<32x4xf32, #tpu.memory_space<vmem>>, vector<32x4xf32>
    %cst_14 = arith.constant dense<0.000000e+00> : vector<24x4xf32>
    %16 = tpu.matmul %14, %15, %cst_14 {dimension_numbers = #tpu.dot_dimension_numbers<[1], [0], [0], [1], [0, 0, 1, 1], [], []>} : vector<24x32xf32>, vector<32x4xf32>, vector<24x4xf32> -> vector<24x4xf32>
    %c0_15 = arith.constant 0 : index
    %c0_16 = arith.constant 0 : index
    %17 = vector.load %arg7[%c0_15, %c0_16] : memref<1x4xf32, #tpu.memory_space<vmem>>, vector<1x4xf32>
    %18 = vector.broadcast %17 : vector<1x4xf32> to vector<24x4xf32>
    %19 = arith.addf %16, %18 : vector<24x4xf32>
    %20 = math.tanh %19 : vector<24x4xf32>
    %c0_17 = arith.constant 0 : index
    %c0_18 = arith.constant 0 : index
    %21 = vector.load %arg8[%c0_17, %c0_18] : memref<24x4xf32, #tpu.memory_space<vmem>>, vector<24x4xf32>
    tpu.vector_store %arg8[%c0_17, %c0_18], %20 {strides = array<i32>} : memref<24x4xf32, #tpu.memory_space<vmem>>, vector<24x4xf32>,
    return
  }
  func.func @transform_0(%arg0: i32) -> (i32, i32) {
    %c0_i32 = arith.constant 0 : i32
    %c0_i32_0 = arith.constant 0 : i32
    return %arg0, %c0_i32 : i32, i32
  }
  func.func @transform_1(%arg0: i32) -> (i32, i32) {
    %c0_i32 = arith.constant 0 : i32
    %c0_i32_0 = arith.constant 0 : i32
    %c0_i32_1 = arith.constant 0 : i32
    return %c0_i32, %c0_i32_0 : i32, i32
  }
  func.func @transform_2(%arg0: i32) -> (i32, i32) {
    %c0_i32 = arith.constant 0 : i32
    %c0_i32_0 = arith.constant 0 : i32
    %c0_i32_1 = arith.constant 0 : i32
    return %c0_i32, %c0_i32_0 : i32, i32
  }
  func.func @transform_3(%arg0: i32) -> (i32, i32) {
    %c0_i32 = arith.constant 0 : i32
    %c0_i32_0 = arith.constant 0 : i32
    %c0_i32_1 = arith.constant 0 : i32
    return %c0_i32, %c0_i32_0 : i32, i32
  }
  func.func @transform_4(%arg0: i32) -> (i32, i32) {
    %c0_i32 = arith.constant 0 : i32
    %c0_i32_0 = arith.constant 0 : i32
    %c0_i32_1 = arith.constant 0 : i32
    return %c0_i32, %c0_i32_0 : i32, i32
  }
  func.func @transform_5(%arg0: i32) -> (i32, i32) {
    %c0_i32 = arith.constant 0 : i32
    %c0_i32_0 = arith.constant 0 : i32
    %c0_i32_1 = arith.constant 0 : i32
    return %c0_i32, %c0_i32_0 : i32, i32
  }
  func.func @transform_6(%arg0: i32) -> (i32, i32) {
    %c0_i32 = arith.constant 0 : i32
    %c0_i32_0 = arith.constant 0 : i32
    %c0_i32_1 = arith.constant 0 : i32
    return %c0_i32, %c0_i32_0 : i32, i32
  }
  func.func @transform_7(%arg0: i32) -> (i32, i32) {
    %c0_i32 = arith.constant 0 : i32
    %c0_i32_0 = arith.constant 0 : i32
    return %arg0, %c0_i32 : i32, i32
  }
}

</mosaic_0001>

<bundles_post_ra>
// kernel: simple_fc_forward.1
= control target key start
LH: loop header
LB: loop body
LE: loop exit
PB: predicated region body
PF: predicated region fallthrough
CT: control target
= control target key end

     0   :  { %s826_s24 = smov 0   ;;  %s913_s0 = inlined_call_operand.vmem [shape: f32[48,16], index: 0, kind: input, shape index: {}]   ;;  %s914_s1 = inlined_call_operand.vmem [shape: f32[16,32], index: 1, kind: input, shape index: {}]   ;;  %s915_s2 = inlined_call_operand.vmem [shape: f32[1,32], index: 2, kind: input, shape index: {}]   ;;  %s916_s3 = inlined_call_operand.vmem [shape: f32[32,32], index: 3, kind: input, shape index: {}]   ;;  %s917_s4 = inlined_call_operand.vmem [shape: f32[1,32], index: 4, kind: input, shape index: {}]   ;;  %s918_s5 = inlined_call_operand.vmem [shape: f32[32,4], index: 5, kind: input, shape index: {}]   ;;  %s919_s6 = inlined_call_operand.vmem [shape: f32[1,4], index: 6, kind: input, shape index: {}]   ;;  %s920_s7 = inlined_call_operand.vmem [shape: f32[48,4], index: 7, kind: output, shape index: {}]  }
   0x1 LB: > { %s654_s25 = sadd.s32 4294967295, %s781_s24   ;;  %p658_p0 = scmp.ge.s32.totalorder %s781_s24, 1  ;;  %s781_s24 = sphi %s826_s24, %s17_s24  }
   0x2   : > { %p238_p1 = scmp.lt.s32.totalorder %s781_s24, 3 }
   0x4   : > { %p239_p2 = pnand %p658_p0, %p238_p1 }
   0x5   : > { %v285_v0 = vld [vmem:[%s914_s1] sm:$0xff] (!%p239_p2)  ;;  %v286_v1 = vld [vmem:[%s914_s1 + $0x8] sm:$0xff] (!%p239_p2)  ;;  %s270_s30 = smul.u32 (!%p239_p2), 3, %s654_s25  ;;  %v783_v2 = vmov (!%p239_p2), 0.0|0.0   ;;  %vm784_vm0 = vmmov (!%p239_p2), 0   ;;  %v785_v4 = vmov (!%p239_p2), 0.0  }
   0x6   : > { %242 = sbr.rel (%p239_p2) target bundleno = 683 (0x2ab), region = 48  ;;  %741 = vmatprep.subr.bf16.mxu0 (!%p239_p2), %v783_v2  ;;  %v742_v3 = vpack.c.bf16 (!%p239_p2), %v286_v1, %v285_v0  ;;  %698 = vmatprep.mubr.msk.f32.mxu0 (!%p239_p2), %vm784_vm0, %v785_v4  ;;  %v387_v5 = vld [vmem:[%s916_s3] sm:$0xff] (!%p239_p2)  ;;  %v388_v6 = vld [vmem:[%s916_s3 + $0x8] sm:$0xff] (!%p239_p2)  ;;  %vm294_vm1 = vcmask (!%p239_p2), 130048   ;;  %v389_v11 = vld [vmem:[%s916_s3 + $0x10] sm:$0xff] (!%p239_p2)  ;;  %vm398_vm2 = vcmask (!%p239_p2), 261120  }
   0x7   : > { %p271_p3 = scmp.lt.s32.totalorder (!%p239_p2), %s270_s30, 5  ;;  %756 = vmatprep.subr.bf16.mxu1 (!%p239_p2), %v783_v2  ;;  %704 = vmatprep.mubr.msk.f32.mxu1 (!%p239_p2), %vm784_vm0, %v785_v4  ;;  %v745_v7 = vpack.c.bf16 (!%p239_p2), %v388_v6, %v387_v5  ;;  %v390_v12 = vld [vmem:[%s916_s3 + $0x18] sm:$0xff] (!%p239_p2)  ;;  %v491_v14 = vld [vmem:[%s918_s5] sm:$0xff] (!%p239_p2)  ;;  %v492_v15 = vld [vmem:[%s918_s5 + $0x8] sm:$0xff] (!%p239_p2)  ;;  %vm594_vm3 = vcmask (!%p239_p2), 31744  }
   0x8   : > { %743 = vmatpush3.bf16.msra.mxu0 (!%p239_p2), %v742_v3  ;;  %757 = vmatpush3.bf16.msra.mxu1 (!%p239_p2), %v742_v3  ;;  %v748_v13 = vpack.c.bf16 (!%p239_p2), %v390_v12, %v389_v11  ;;  %v751_v16 = vpack.c.bf16 (!%p239_p2), %v492_v15, %v491_v14  ;;  %v661_v17 = vld [vmem:[%s915_s2] ss:$0 sm:$0xff] (!%p239_p2)  ;;  %v493_v30 = vld [vmem:[%s918_s5 + $0x10] sm:$0xff] (!%p239_p2)  ;;  %v494_v31 = vld [vmem:[%s918_s5 + $0x18] sm:$0xff] (!%p239_p2) }
   0x9   : > { %744 = vmatprep.subr.bf16.mxu1 (!%p239_p2), %v783_v2  ;;  %750 = vmatprep.subr.bf16.mxu0 (!%p239_p2), %v783_v2  ;;  %v754_v32 = vpack.c.bf16 (!%p239_p2), %v494_v31, %v493_v30  ;;  %v665_v33 = vld [vmem:[%s917_s4] ss:$0 sm:$0xff] (!%p239_p2) }
   0xa   : > { %v669_v46 = vld [vmem:[%s919_s6] ss:$0 sm:$0xff] (!%p239_p2) }
   0xd   : > { %s922_s30 = smov (!%p271_p3, %s270_s30), 5 }
   0xe   : > { %s659_s12 = sshll.u32 %s922_s30, 3 }
   0xf   : > { %s274_s15 = scalar_lea.vmem %s913_s0, %s659_s12  ;;  %s280_s16 = scalar_lea.vmem %s920_s7, %s659_s12 }
  0x10   : > { %v282_v8 = vld [vmem:[%s274_s15] sm:$0xff]  ;;  %v284_v9 = vld [vmem:[%s274_s15 + $0x10] sm:$0xff]  ;;  %v283_v10 = vld [vmem:[%s274_s15 + $0x8] sm:$0xff] }
  0x11   : > { %699 = vmatmul.mubr.msk.f32.vlgmr.msra.gmra.mrb[0].mxu0 %vm294_vm1, %v282_v8  ;;  %705 = vmatmul.mubr.msk.f32.vlgmr.msra.gmra.mrb[0].mxu1 %vm294_vm1, %v284_v9 }
  0x12   : > { %701 = vmatprep.mubr.msk.f32.mxu0 %vm784_vm0, %v785_v4  ;;  %746 = vmatpush3.bf16.msra.mxu1 %v745_v7 }
  0x13   : > { %747 = vmatprep.subr.bf16.mxu1 %v783_v2  ;;  %715 = vmatprep.mubr.msk.f32.mxu1 %vm784_vm0, %v785_v4 }
  0x14   : > { %752 = vmatpush3.bf16.msra.mxu0 %v751_v16 }
  0x15   : > { %702 = vmatmul.mubr.msk.f32.gmra.mrb[2].mxu0 %vm294_vm1, %v283_v10  ;;  %753 = vmatprep.subr.bf16.mxu0 %v783_v2 }
  0x16   : > { %732 = vmatprep.mubr.msk.f32.mxu0 %vm784_vm0, %v785_v4  ;;  %749 = vmatpush3.bf16.msra.mxu1 %v748_v13 }
  0x18   : > { %755 = vmatpush3.bf16.msra.mxu0 %v754_v32 }
  0xe4   : > { %v370_v18 = vpop.f32.mrb[0].mxu0  ;;  %v380_v19 = vpop.f32.mrb[0].mxu1 }
  0xe5   : > { %v371_v20 = vadd.f32 %v661_v17, %v370_v18  ;;  %v700_v21 = vpop.f32.mrb[1].mxu0  ;;  %v706_v22 = vpop.f32.mrb[1].mxu1  ;;  %v381_v27 = vadd.f32 %v661_v17, %v380_v19 }
  0xe7   : > { %v384_v23 = vmax.f32 %v371_v20, 0.0  ;;  %v386_v29 = vmax.f32 %v381_v27, 0.0 }
  0xe8   : > { %v375_v24 = vpop.f32.mrb[2].mxu0 }
  0xe9   : > { %v376_v25 = vadd.f32 %v661_v17, %v375_v24  ;;  %v703_v26 = vpop.f32.mrb[3].mxu0  ;;  %716 = vmatmul.mubr.msk.f32.vlgmr.msra.gmra.mrb[2].mxu1 %vm398_vm2, %v384_v23 }
  0xea   : > { %718 = vmatprep.mubr.msk.f32.mxu1 %vm784_vm0, %v785_v4 }
  0xeb   : > { %v385_v28 = vmax.f32 %v376_v25, 0.0 }
  0xed   : > { %719 = vmatmul.mubr.msk.f32.gmra.mrb[4].mxu1 %vm398_vm2, %v385_v28 }
  0xee   : > { %721 = vmatprep.mubr.msk.f32.mxu1 %vm784_vm0, %v785_v4 }
  0xf1   : > { %722 = vmatmul.mubr.msk.f32.gmra.mrb[6].mxu1 %vm398_vm2, %v386_v29 }
 0x1bc   : > { %v474_v34 = vpop.f32.mrb[2].mxu1 }
 0x1bd   : > { %v475_v35 = vadd.f32 %v665_v33, %v474_v34  ;;  %v717_v36 = vpop.f32.mrb[3].mxu1 }
 0x1bf   : > { %v488_v37 = vmax.f32 %v475_v35, 0.0 }
 0x1c0   : > { %v479_v38 = vpop.f32.mrb[4].mxu1 }
 0x1c1   : > { %v480_v39 = vadd.f32 %v665_v33, %v479_v38  ;;  %v720_v40 = vpop.f32.mrb[5].mxu1  ;;  %733 = vmatmul.mubr.msk.f32.vlgmr.msra.gmra.mrb[4].mxu0 %vm398_vm2, %v488_v37 }
 0x1c2   : > { %735 = vmatprep.mubr.msk.f32.mxu0 %vm784_vm0, %v785_v4 }
 0x1c3   : > { %v489_v41 = vmax.f32 %v480_v39, 0.0 }
 0x1c4   : > { %v484_v42 = vpop.f32.mrb[6].mxu1 }
 0x1c5   : > { %v485_v43 = vadd.f32 %v665_v33, %v484_v42  ;;  %v723_v44 = vpop.f32.mrb[7].mxu1  ;;  %736 = vmatmul.mubr.msk.f32.gmra.mrb[6].mxu0 %vm398_vm2, %v489_v41 }
 0x1c6   : > { %738 = vmatprep.mubr.msk.f32.mxu0 %vm784_vm0, %v785_v4 }
 0x1c7   : > { %v490_v45 = vmax.f32 %v485_v43, 0.0 }
 0x1c9   : > { %739 = vmatmul.mubr.msk.f32.gmra.mrb[8].mxu0 %vm398_vm2, %v490_v45 }
 0x294   : > { %v577_v47 = vpop.f32.mrb[4].mxu0 }
 0x295   : > { %v578_v48 = vadd.f32 %v669_v46, %v577_v47  ;;  %v734_v49 = vpop.f32.mrb[5].mxu0 }
 0x297   : > { %769 = vtanh.f32 %v578_v48 }
 0x298   : > { %v582_v50 = vpop.f32.mrb[6].mxu0 }
 0x299   : > { %v583_v51 = vadd.f32 %v669_v46, %v582_v50  ;;  %v737_v52 = vpop.f32.mrb[7].mxu0 }
 0x29b   : > { %771 = vtanh.f32 %v583_v51 }
 0x29c   : > { %v587_v53 = vpop.f32.mrb[8].mxu0 }
 0x29d   : > { %v588_v54 = vadd.f32 %v669_v46, %v587_v53  ;;  %v740_v55 = vpop.f32.mrb[9].mxu0 }
 0x29f   : > { %773 = vtanh.f32 %v588_v54 }
 0x2a1   : > { %v770_v56 = vpop.eup %769 }
 0x2a2   : > { %595 = vst.msk [vmem:[%s280_s16] sm:$0xff] %vm594_vm3, %v770_v56 }
 0x2a5   : > { %v772_v57 = vpop.eup %771 }
 0x2a6   : > { %596 = vst.msk [vmem:[%s280_s16 + $0x8] sm:$0xff] %vm594_vm3, %v772_v57 }
 0x2a9   : > { %v774_v58 = vpop.eup %773 }
 0x2aa   : > { %597 = vst.msk [vmem:[%s280_s16 + $0x10] sm:$0xff] %vm594_vm3, %v774_v58 }
 0x2ab PF: > { %s17_s24 = sadd.s32 1, %s781_s24  }
 0x2ac   : > { %p14_p4 = scmp.ge.s32.totalorder %s17_s24, 4  }
 0x2ae   :  { %16 = sbr.rel (!%p14_p4) target bundleno = 1 (0x1), region = 78 }

</bundles_post_ra>
